<compile_context>
chip_gen: v7x
topology: tpu7x:2x2x1
jax: 0.10.0
libtpu: 0.0.40
codegen_flags: <defaults>
</compile_context>

<pallas_src>
import jax
import jax.numpy as jnp
from jax import lax
from jax.experimental import pallas as pl
from jax.experimental.pallas import tpu as pltpu


_MIN_SUBLANE = 8
# Cap on the row tile: 64K rows of (F_in+F_out)=48 f32 is ~12 MiB of traffic
# per step -> per-step overhead is <5% even at v7x HBM rates, while keeping
# double-buffered VMEM use modest on every generation.
_MAX_BLOCK_ROWS = 65536


def _predictor_kernel(z_ref, w_ref, b_ref, o_ref):
    # z_ref: (TM, F_in)   w_ref: (F_out, F_in)   b_ref: (1, F_out)   o_ref: (TM, F_out)
    z = z_ref[...]
    w = w_ref[...]
    # Contract F_in of z against F_in of w -> (TM, F_out). No transpose needed.
    y = lax.dot_general(
        z, w,
        dimension_numbers=(((1,), (1,)), ((), ())),
        preferred_element_type=jnp.float32,
    )
    y = y + b_ref[...]
    # 2 * sigmoid(y) == 1 + tanh(y / 2): one EUP transcendental, f32 epilogue.
    o_ref[...] = (1.0 + jnp.tanh(0.5 * y)).astype(o_ref.dtype)


def _vmem_capacity_bytes():
    """Physical VMEM of the current chip; conservative fallback = 64 MiB (v7x)."""
    try:
        info = pltpu.get_tpu_info()
        cap = int(getattr(info, "vmem_capacity_bytes", 0))
        if cap > 0:
            return cap
    except Exception:
        pass
    return 64 << 20


def _round_down_mult(x, m):
    return (x // m) * m


def _round_up_mult(x, m):
    return ((x + m - 1) // m) * m


def _pick_row_tile(M, F_in, F_out, in_itemsize, out_itemsize, param_bytes, vmem_cap):
    """Row tile sized against the per-generation VMEM budget.

    Accounts for double-buffered z and out blocks plus resident weight/bias,
    and guarantees >=2 grid steps (v7x dual-TensorCore sharding) when M > 8.
    """
    vmem_budget = int(vmem_cap * 0.6)
    per_row = 2 * (F_in * in_itemsize + F_out * out_itemsize)  # 2x: double buffered
    usable = max(vmem_budget - 2 * param_bytes, per_row * _MIN_SUBLANE)
    tm_cap = max(_MIN_SUBLANE, _round_down_mult(usable // per_row, _MIN_SUBLANE))
    tm_cap = min(tm_cap, _MAX_BLOCK_ROWS)

    if M <= _MIN_SUBLANE:
        # Single full-array block (block dim == array dim, so no 8-alignment needed).
        return M

    # >=2 grid steps so the "parallel" row axis can use both TCs on v7x.
    two_step_tm = _round_up_mult(pl.cdiv(M, 2), _MIN_SUBLANE)
    tm = min(tm_cap, two_step_tm)
    return max(_MIN_SUBLANE, _round_down_mult(tm, _MIN_SUBLANE))


def predictor_for_lstm(z, weight, bias, *, block_rows=None):
    """z: (..., in_features); weight: (out_features, in_features); bias: (out_features,).

    All leading dims of z are flattened into one row axis so one kernel call
    processes every row (timesteps * batch for the LSTM use case).
    """
    F_out, F_in = weight.shape
    lead_shape = z.shape[:-1]
    z2d = z.reshape(-1, F_in)              # (M, F_in)
    M = z2d.shape[0]
    b2d = bias.reshape(1, F_out)

    z_item = jnp.dtype(z.dtype).itemsize
    w_item = jnp.dtype(weight.dtype).itemsize
    b_item = jnp.dtype(bias.dtype).itemsize
    param_bytes = F_out * F_in * w_item + F_out * b_item

    vmem_cap = _vmem_capacity_bytes()
    if block_rows is None:
        tm = _pick_row_tile(M, F_in, F_out, z_item, z_item, param_bytes, vmem_cap)
    else:
        tm = M if M <= block_rows else max(_MIN_SUBLANE,
                                           _round_down_mult(block_rows, _MIN_SUBLANE))
    grid = (pl.cdiv(M, tm),)

    cost = pl.CostEstimate(
        flops=2 * M * F_in * F_out,
        transcendentals=M * F_out,
        bytes_accessed=(M * F_in * z_item            # read z
                        + M * F_out * z_item         # write out
                        + F_out * F_in * w_item      # read weight
                        + F_out * b_item),           # read bias
    )

    # Explicit scoped-VMEM limit: above the v5e/v6e defaults, inside v7x's 64 MiB.
    vmem_limit = min(int(vmem_cap * 0.75), 112 << 20)

    out2d = pl.pallas_call(
        _predictor_kernel,
        out_shape=jax.ShapeDtypeStruct((M, F_out), z.dtype),
        grid=grid,
        in_specs=[
            pl.BlockSpec((tm, F_in), lambda i: (i, 0)),       # z rows tile
            pl.BlockSpec((F_out, F_in), lambda i: (0, 0)),    # weight, resident
            pl.BlockSpec((1, F_out), lambda i: (0, 0)),       # bias, resident
        ],
        out_specs=pl.BlockSpec((tm, F_out), lambda i: (i, 0)),
        compiler_params=pltpu.CompilerParams(
            dimension_semantics=("parallel",),
            vmem_limit_bytes=vmem_limit,
        ),
        cost_estimate=cost,
    )(z2d, weight, b2d)

    return out2d.reshape(*lead_shape, F_out)


if __name__ == "__main__":
    # LSTM-style use: predictor applied across all timesteps in one call.
    seq = 16
    batch = 8
    in_features = 32
    out_features = 16

    key = jax.random.PRNGKey(0)
    kz, kw, kb = jax.random.split(key, 3)

    z = jax.random.normal(kz, (seq, batch, in_features), dtype=jnp.float32)

    # Deterministic init mimicking nn.Linear: U(-1/sqrt(in), 1/sqrt(in))
    bound = 1.0 / jnp.sqrt(jnp.float32(in_features))
    weight = jax.random.uniform(
        kw, (out_features, in_features), minval=-bound, maxval=bound,
        dtype=jnp.float32)
    bias = jax.random.uniform(
        kb, (out_features,), minval=-bound, maxval=bound, dtype=jnp.float32)

    out = predictor_for_lstm(z, weight, bias)
    out = jax.block_until_ready(out)

    # Reference check in plain JAX.
    ref = 2.0 * jax.nn.sigmoid(z @ weight.T + bias)
    assert out.shape == (seq, batch, out_features)
    assert jnp.allclose(out, ref, atol=1e-5, rtol=1e-5)

    print("KERNEL_OK")
</pallas_src>

<mosaic_0001>
module attributes {stable_mosaic.version = 11 : i64} {
  func.func @_predictor_kernel(%arg0: i32, %arg1: memref<64x32xf32, #tpu.memory_space<vmem>>, %arg2: memref<16x32xf32, #tpu.memory_space<vmem>>, %arg3: memref<1x16xf32, #tpu.memory_space<vmem>>, %arg4: memref<64x16xf32, #tpu.memory_space<vmem>>) attributes {dimension_semantics = [#tpu.dimension_semantics<parallel>], iteration_bounds = array<i64: 2>, scalar_prefetch = 0 : i64, scratch_operands = 0 : i64, tpu.core_type = #tpu.core_type<tc>, window_params = [{transform_indices = @transform_0, window_bounds = array<i64: 64, 32>}, {pipeline_mode = #tpu.pipeline_mode<synchronous>, transform_indices = @transform_1, window_bounds = array<i64: 16, 32>}, {pipeline_mode = #tpu.pipeline_mode<synchronous>, transform_indices = @transform_2, window_bounds = array<i64: 1, 16>}, {transform_indices = @transform_3, window_bounds = array<i64: 64, 16>}]} {
    %c0 = arith.constant 0 : index
    %c0_0 = arith.constant 0 : index
    %0 = vector.load %arg1[%c0, %c0_0] : memref<64x32xf32, #tpu.memory_space<vmem>>, vector<64x32xf32>
    %c0_1 = arith.constant 0 : index
    %c0_2 = arith.constant 0 : index
    %1 = vector.load %arg2[%c0_1, %c0_2] : memref<16x32xf32, #tpu.memory_space<vmem>>, vector<16x32xf32>
    %cst = arith.constant dense<0.000000e+00> : vector<64x16xf32>
    %2 = tpu.matmul %0, %1, %cst {dimension_numbers = #tpu.dot_dimension_numbers<[1], [1], [0], [0], [0, 0, 1, 0], [], []>} : vector<64x32xf32>, vector<16x32xf32>, vector<64x16xf32> -> vector<64x16xf32>
    %c0_3 = arith.constant 0 : index
    %c0_4 = arith.constant 0 : index
    %3 = vector.load %arg3[%c0_3, %c0_4] : memref<1x16xf32, #tpu.memory_space<vmem>>, vector<1x16xf32>
    %4 = vector.broadcast %3 : vector<1x16xf32> to vector<64x16xf32>
    %5 = arith.addf %2, %4 : vector<64x16xf32>
    %cst_5 = arith.constant 5.000000e-01 : f32
    %6 = vector.broadcast %cst_5 : f32 to vector<64x16xf32>
    %7 = arith.mulf %6, %5 : vector<64x16xf32>
    %8 = math.tanh %7 : vector<64x16xf32>
    %cst_6 = arith.constant 1.000000e+00 : f32
    %9 = vector.broadcast %cst_6 : f32 to vector<64x16xf32>
    %10 = arith.addf %9, %8 : vector<64x16xf32>
    %c0_7 = arith.constant 0 : index
    %c0_8 = arith.constant 0 : index
    %11 = vector.load %arg4[%c0_7, %c0_8] : memref<64x16xf32, #tpu.memory_space<vmem>>, vector<64x16xf32>
    tpu.vector_store %arg4[%c0_7, %c0_8], %10 {strides = array<i32>} : memref<64x16xf32, #tpu.memory_space<vmem>>, vector<64x16xf32>,
    return
  }
  func.func @transform_0(%arg0: i32) -> (i32, i32) {
    %c0_i32 = arith.constant 0 : i32
    %c0_i32_0 = arith.constant 0 : i32
    return %arg0, %c0_i32 : i32, i32
  }
  func.func @transform_1(%arg0: i32) -> (i32, i32) {
    %c0_i32 = arith.constant 0 : i32
    %c0_i32_0 = arith.constant 0 : i32
    %c0_i32_1 = arith.constant 0 : i32
    return %c0_i32, %c0_i32_0 : i32, i32
  }
  func.func @transform_2(%arg0: i32) -> (i32, i32) {
    %c0_i32 = arith.constant 0 : i32
    %c0_i32_0 = arith.constant 0 : i32
    %c0_i32_1 = arith.constant 0 : i32
    return %c0_i32, %c0_i32_0 : i32, i32
  }
  func.func @transform_3(%arg0: i32) -> (i32, i32) {
    %c0_i32 = arith.constant 0 : i32
    %c0_i32_0 = arith.constant 0 : i32
    return %arg0, %c0_i32 : i32, i32
  }
}

</mosaic_0001>

<bundles_post_ra>
// kernel: tpu_custom_call.1
= control target key start
LH: loop header
LB: loop body
LE: loop exit
PB: predicated region body
PF: predicated region fallthrough
CT: control target
= control target key end

     0   :  { %s524_s12 = smov 0   ;;  %s575_s0 = inlined_call_operand.vmem [shape: f32[128,32], index: 0, kind: input, shape index: {}]   ;;  %s576_s1 = inlined_call_operand.vmem [shape: f32[16,32], index: 1, kind: input, shape index: {}]   ;;  %s577_s2 = inlined_call_operand.vmem [shape: f32[1,16], index: 2, kind: input, shape index: {}]   ;;  %s578_s3 = inlined_call_operand.vmem [shape: f32[128,16], index: 3, kind: output, shape index: {}]  }
   0x1 LB: > { %s416_s13 = sadd.s32 4294967295, %s502_s12   ;;  %p420_p0 = scmp.ge.s32.totalorder %s502_s12, 1  ;;  %s502_s12 = sphi %s524_s12, %s13_s12  }
   0x2   : > { %p138_p1 = scmp.lt.s32.totalorder %s502_s12, 3 }
   0x4   : > { %p139_p2 = pnand %p420_p0, %p138_p1 }
   0x5   : > { %v182_v0 = vld [vmem:[%s576_s1] sm:$0xff] (!%p139_p2)  ;;  %v183_v1 = vld [vmem:[%s576_s1 + $0x8] sm:$0xff] (!%p139_p2)  ;;  %vm191_vm0 = vcmask (!%p139_p2), 261120   ;;  %s421_s18 = sshll.u32 (!%p139_p2), %s416_s13, 3  ;;  %vm351_vm2 = vcmask (!%p139_p2), 130048  }
   0x6   : > { %142 = sbr.rel (%p139_p2) target bundleno = 255 (0xff), region = 32  ;;  %v464_v2 = vpack.c.bf16 (!%p139_p2), %v183_v1, %v182_v0  ;;  %vm465_vm1 = vmpackc.low (!%p139_p2), %vm191_vm0, %vm191_vm0  ;;  %p163_p3 = scmp.lt.s32.totalorder (!%p139_p2), %s421_s18, 15  ;;  %v425_v11 = vld [vmem:[%s577_s2] ss:$0 sm:$0xff] (!%p139_p2) }
   0x8   : > { %466 = vmatprep.subr.msk.bf16.mxu0 (!%p139_p2), %vm465_vm1, %v464_v2  ;;  %470 = vmatprep.subr.msk.bf16.mxu1 (!%p139_p2), %vm465_vm1, %v464_v2 }
   0x9   : > { %469 = vmatpush3.bf16.xpose.msk.msra.mxu0 (!%p139_p2), %vm465_vm1, %v464_v2  ;;  %471 = vmatpush3.bf16.xpose.msk.msra.mxu1 (!%p139_p2), %vm465_vm1, %v464_v2 }
   0xd   : > { %s580_s18 = smov (!%p163_p3, %s421_s18), 15 }
   0xe   : > { %s422_s19 = sshll.u32 %s580_s18, 3 }
   0xf   : > { %s166_s22 = scalar_lea.vmem %s575_s0, %s422_s19  ;;  %s172_s27 = scalar_lea.vmem %s578_s3, %s422_s19 }
  0x10   : > { %v174_v3 = vld [vmem:[%s166_s22] sm:$0xff]  ;;  %v175_v5 = vld [vmem:[%s166_s22 + $0x8] sm:$0xff]  ;;  %v176_v7 = vld [vmem:[%s166_s22 + $0x10] sm:$0xff] }
  0x11   : > { %v178_v4 = vld [vmem:[%s166_s22 + $0x20] sm:$0xff]  ;;  %452 = vmatprep.mubr.msk.f32.mxu0 %vm191_vm0, %v174_v3  ;;  %v179_v6 = vld [vmem:[%s166_s22 + $0x28] sm:$0xff]  ;;  %v180_v8 = vld [vmem:[%s166_s22 + $0x30] sm:$0xff] }
  0x12   : > { %458 = vmatprep.mubr.msk.f32.mxu1 %vm191_vm0, %v178_v4  ;;  %453 = vmatmul.mubr.msk.f32.vlgmr.msra.gmra.mrb[0].mxu0 %vm191_vm0, %v175_v5  ;;  %v177_v9 = vld [vmem:[%s166_s22 + $0x18] sm:$0xff] }
  0x13   : > { %459 = vmatmul.mubr.msk.f32.vlgmr.msra.gmra.mrb[0].mxu1 %vm191_vm0, %v179_v6  ;;  %455 = vmatprep.mubr.msk.f32.mxu0 %vm191_vm0, %v176_v7  ;;  %v181_v10 = vld [vmem:[%s166_s22 + $0x38] sm:$0xff] }
  0x14   : > { %461 = vmatprep.mubr.msk.f32.mxu1 %vm191_vm0, %v180_v8 }
  0x16   : > { %456 = vmatmul.mubr.msk.f32.gmra.mrb[2].mxu0 %vm191_vm0, %v177_v9 }
  0x17   : > { %462 = vmatmul.mubr.msk.f32.gmra.mrb[2].mxu1 %vm191_vm0, %v181_v10 }
  0xe5   : > { %v454_v12 = vpop.f32.mrb[0].mxu0 }
  0xe6   : > { %v460_v13 = vpop.f32.mrb[0].mxu1  ;;  %v294_v14 = vadd.f32 %v454_v12, %v425_v11  ;;  %v288_v16 = vpop.f32.mrb[1].mxu0 }
  0xe7   : > { %v314_v15 = vadd.f32 %v460_v13, %v425_v11  ;;  %v308_v17 = vpop.f32.mrb[1].mxu1  ;;  %v289_v18 = vadd.f32 %v425_v11, %v288_v16 }
  0xe8   : > { %v309_v19 = vadd.f32 %v425_v11, %v308_v17  ;;  %v328_v20 = vmul.f32 0.5, %v294_v14 }
  0xe9   : > { %v332_v21 = vmul.f32 0.5, %v314_v15  ;;  %v327_v22 = vmul.f32 0.5, %v289_v18  ;;  %v457_v24 = vpop.f32.mrb[2].mxu0 }
  0xea   : > { %v331_v23 = vmul.f32 0.5, %v309_v19  ;;  %v463_v25 = vpop.f32.mrb[2].mxu1  ;;  %480 = vtanh.f32 %v328_v20  ;;  %v304_v26 = vadd.f32 %v457_v24, %v425_v11  ;;  %v298_v28 = vpop.f32.mrb[3].mxu0 }
  0xeb   : > { %v324_v27 = vadd.f32 %v463_v25, %v425_v11  ;;  %v318_v29 = vpop.f32.mrb[3].mxu1  ;;  %482 = vtanh.f32 %v332_v21  ;;  %v299_v30 = vadd.f32 %v425_v11, %v298_v28 }
  0xec   : > { %v319_v31 = vadd.f32 %v425_v11, %v318_v29  ;;  %484 = vtanh.f32 %v327_v22  ;;  %v330_v32 = vmul.f32 0.5, %v304_v26 }
  0xed   : > { %v334_v33 = vmul.f32 0.5, %v324_v27  ;;  %486 = vtanh.f32 %v331_v23  ;;  %v329_v34 = vmul.f32 0.5, %v299_v30 }
  0xee   : > { %v333_v35 = vmul.f32 0.5, %v319_v31  ;;  %488 = vtanh.f32 %v330_v32 }
  0xef   : > { %490 = vtanh.f32 %v334_v33 }
  0xf0   : > { %492 = vtanh.f32 %v329_v34 }
  0xf1   : > { %494 = vtanh.f32 %v333_v35 }
  0xf4   : > { %v481_v36 = vpop.eup %480 }
  0xf5   : > { %v483_v37 = vpop.eup %482  ;;  %v344_v38 = vadd.f32 1.0, %v481_v36 }
  0xf6   : > { %v485_v39 = vpop.eup %484  ;;  %v348_v40 = vadd.f32 1.0, %v483_v37 }
  0xf7   : > { %v487_v41 = vpop.eup %486  ;;  %353 = vst.msk [vmem:[%s172_s27 + $0x8] sm:$0xff] %vm351_vm2, %v344_v38  ;;  %v343_v42 = vadd.f32 1.0, %v485_v39 }
  0xf8   : > { %v489_v43 = vpop.eup %488  ;;  %357 = vst.msk [vmem:[%s172_s27 + $0x28] sm:$0xff] %vm351_vm2, %v348_v40  ;;  %v347_v44 = vadd.f32 1.0, %v487_v41 }
  0xf9   : > { %v491_v45 = vpop.eup %490  ;;  %352 = vst.msk [vmem:[%s172_s27] sm:$0xff] %vm351_vm2, %v343_v42  ;;  %v346_v46 = vadd.f32 1.0, %v489_v43 }
  0xfa   : > { %v493_v47 = vpop.eup %492  ;;  %356 = vst.msk [vmem:[%s172_s27 + $0x20] sm:$0xff] %vm351_vm2, %v347_v44  ;;  %v350_v48 = vadd.f32 1.0, %v491_v45 }
  0xfb   : > { %v495_v49 = vpop.eup %494  ;;  %355 = vst.msk [vmem:[%s172_s27 + $0x18] sm:$0xff] %vm351_vm2, %v346_v46  ;;  %v345_v50 = vadd.f32 1.0, %v493_v47 }
  0xfc   : > { %359 = vst.msk [vmem:[%s172_s27 + $0x38] sm:$0xff] %vm351_vm2, %v350_v48  ;;  %v349_v51 = vadd.f32 1.0, %v495_v49 }
  0xfd   : > { %354 = vst.msk [vmem:[%s172_s27 + $0x10] sm:$0xff] %vm351_vm2, %v345_v50 }
  0xfe   : > { %358 = vst.msk [vmem:[%s172_s27 + $0x30] sm:$0xff] %vm351_vm2, %v349_v51 }
  0xff PF: > { %s13_s12 = sadd.s32 1, %s502_s12  }
 0x100   : > { %p10_p4 = scmp.ge.s32.totalorder %s13_s12, 4  }
 0x102   :  { %12 = sbr.rel (!%p10_p4) target bundleno = 1 (0x1), region = 62 }

</bundles_post_ra>
